<compile_context>
chip_gen: v5e
topology: v5e:2x2
jax: 0.10.0
libtpu: 0.0.40
codegen_flags: <defaults>
</compile_context>

<pallas_src>
import math

import jax
import jax.numpy as jnp
from jax.experimental import pallas as pl
from jax.experimental.pallas import tpu as pltpu

_C = math.sqrt(2.0 / math.pi)
_K = _C * 0.044715  # fold the cubic-term scale into the tanh-argument constant


def _gelu_math(x):
    """Tanh-approximation GELU with f32 internal compute (PyTorch opmath)."""
    xf = x if x.dtype == jnp.float32 else x.astype(jnp.float32)
    x2 = xf * xf
    inner = xf * (_C + _K * x2)  # == _C * (x + 0.044715 * x**3), one fewer VALU op
    return 0.5 * xf * (1.0 + jnp.tanh(inner))  # tanh goes to the EUP slot


def _gelu_kernel(x_ref, o_ref):
    o_ref[...] = _gelu_math(x_ref[...]).astype(o_ref.dtype)


def gelu_pallas(x, *, tile_rows=8192, lanes=128, donate_input=False):
    """Tanh-approximation GELU matching the PyTorch Gelu module."""
    orig_shape = x.shape
    orig_dtype = x.dtype
    flat = x.reshape(-1)
    n = flat.shape[0]

    n_aligned = (n // lanes) * lanes
    if n_aligned == 0:
        # Tiny tensor (< 128 elements): not worth a kernel launch.
        return _gelu_math(flat).astype(orig_dtype).reshape(orig_shape)

    rows = n_aligned // lanes
    x2d = flat[:n_aligned].reshape(rows, lanes)  # view-only when already aligned

    # Tile selection:
    #  * cap at tile_rows (8192 x 128 f32 = 4 MiB/tile; 2 arrays x 2 pipeline
    #    buffers = 16 MiB) -- fits v7x's 32 MiB scoped VMEM with headroom.
    #  * if everything would fit in <=2 tiles, split into >=2 grid steps so the
    #    "parallel" axis can be sharded across v7x's two TensorCores instead of
    #    collapsing to a single-step, single-TC grid.
    if rows <= 2 * tile_rows:
        tr = max(8, ((pl.cdiv(rows, 2) + 7) // 8) * 8)  # multiple of 8 sublanes
        tr = min(tr, rows)  # full-extent block for very small arrays (always legal)
    else:
        tr = tile_rows
    grid = (pl.cdiv(rows, tr),)

    itemsize = jnp.dtype(orig_dtype).itemsize
    cost = pl.CostEstimate(
        flops=8 * n_aligned,
        transcendentals=n_aligned,
        bytes_accessed=2 * n_aligned * itemsize,
    )

    out2d = pl.pallas_call(
        _gelu_kernel,
        out_shape=jax.ShapeDtypeStruct((rows, lanes), orig_dtype),
        grid_spec=pltpu.PrefetchScalarGridSpec(
            num_scalar_prefetch=0,
            grid=grid,
            in_specs=[pl.BlockSpec((tr, lanes), lambda i: (i, 0))],
            out_specs=pl.BlockSpec((tr, lanes), lambda i: (i, 0)),
        ),
        compiler_params=pltpu.CompilerParams(
            dimension_semantics=("parallel",),
            # Raise scoped-VMEM above the v5e 16 MiB default; 32 MiB is still
            # inside v7x's 64 MiB physical VMEM.
            vmem_limit_bytes=32 << 20,
        ),
        cost_estimate=cost,
        # Elementwise, in/out shape+dtype match and each block is fully
        # overwritten -> safe to alias when the caller donates the input.
        input_output_aliases={0: 0} if donate_input else {},
    )(x2d)

    if n_aligned == n:
        # Fast path: reshape views only -> single 2N-byte HBM streaming pass.
        return out2d.reshape(orig_shape)

    # Ragged path: <128-element tail in plain jnp, no full-tensor pad/slice.
    tail = _gelu_math(flat[n_aligned:]).astype(orig_dtype)
    out_flat = jnp.concatenate([out2d.reshape(-1), tail])
    return out_flat.reshape(orig_shape)


def gelu_ref(x):
    xf = x.astype(jnp.float32)
    y = 0.5 * xf * (1.0 + jnp.tanh(_C * (xf + 0.044715 * xf ** 3)))
    return y.astype(x.dtype)


if __name__ == "__main__":
    key = jax.random.PRNGKey(0)
    x = jax.random.normal(key, (2, 4, 16, 16), dtype=jnp.float32)

    out = jax.block_until_ready(gelu_pallas(x))
    ref = gelu_ref(x)
    assert out.shape == x.shape and out.dtype == x.dtype
    assert jnp.allclose(out, ref, atol=1e-5, rtol=1e-5)

    # Ragged path: 128-aligned prefix through the kernel + <128-element jnp tail.
    x_rag = jax.random.normal(jax.random.PRNGKey(1), (5, 67), dtype=jnp.float32)
    out_rag = jax.block_until_ready(gelu_pallas(x_rag))
    assert jnp.allclose(out_rag, gelu_ref(x_rag), atol=1e-5, rtol=1e-5)

    # bf16 in/out with f32 internal compute (matches PyTorch opmath).
    x_bf = jax.random.normal(jax.random.PRNGKey(2), (2, 4, 16, 16), dtype=jnp.bfloat16)
    out_bf = jax.block_until_ready(gelu_pallas(x_bf))
    assert out_bf.dtype == jnp.bfloat16
    assert jnp.allclose(
        out_bf.astype(jnp.float32), gelu_ref(x_bf).astype(jnp.float32),
        atol=2e-2, rtol=2e-2)

    print("KERNEL_OK")
</pallas_src>

<mosaic_0001>
module attributes {stable_mosaic.version = 11 : i64} {
  func.func @_gelu_kernel(%arg0: i32, %arg1: memref<8x128xf32, #tpu.memory_space<vmem>>, %arg2: memref<8x128xf32, #tpu.memory_space<vmem>>) attributes {dimension_semantics = [#tpu.dimension_semantics<parallel>], iteration_bounds = array<i64: 2>, scalar_prefetch = 0 : i64, scratch_operands = 0 : i64, tpu.core_type = #tpu.core_type<tc>, window_params = [{transform_indices = @transform_0, window_bounds = array<i64: 8, 128>}, {transform_indices = @transform_1, window_bounds = array<i64: 8, 128>}]} {
    %c0 = arith.constant 0 : index
    %c0_0 = arith.constant 0 : index
    %0 = vector.load %arg1[%c0, %c0_0] : memref<8x128xf32, #tpu.memory_space<vmem>>, vector<8x128xf32>
    %1 = arith.mulf %0, %0 : vector<8x128xf32>
    %cst = arith.constant 0.0356774069 : f32
    %2 = vector.broadcast %cst : f32 to vector<8x128xf32>
    %3 = arith.mulf %2, %1 : vector<8x128xf32>
    %cst_1 = arith.constant 0.797884583 : f32
    %4 = vector.broadcast %cst_1 : f32 to vector<8x128xf32>
    %5 = arith.addf %4, %3 : vector<8x128xf32>
    %6 = arith.mulf %0, %5 : vector<8x128xf32>
    %cst_2 = arith.constant 5.000000e-01 : f32
    %7 = vector.broadcast %cst_2 : f32 to vector<8x128xf32>
    %8 = arith.mulf %7, %0 : vector<8x128xf32>
    %9 = math.tanh %6 : vector<8x128xf32>
    %cst_3 = arith.constant 1.000000e+00 : f32
    %10 = vector.broadcast %cst_3 : f32 to vector<8x128xf32>
    %11 = arith.addf %10, %9 : vector<8x128xf32>
    %12 = arith.mulf %8, %11 : vector<8x128xf32>
    %c0_4 = arith.constant 0 : index
    %c0_5 = arith.constant 0 : index
    %13 = vector.load %arg2[%c0_4, %c0_5] : memref<8x128xf32, #tpu.memory_space<vmem>>, vector<8x128xf32>
    tpu.vector_store %arg2[%c0_4, %c0_5], %12 {strides = array<i32>} : memref<8x128xf32, #tpu.memory_space<vmem>>, vector<8x128xf32>,
    return
  }
  func.func @transform_0(%arg0: i32) -> (i32, i32) {
    %c0_i32 = arith.constant 0 : i32
    %c0_i32_0 = arith.constant 0 : i32
    return %arg0, %c0_i32 : i32, i32
  }
  func.func @transform_1(%arg0: i32) -> (i32, i32) {
    %c0_i32 = arith.constant 0 : i32
    %c0_i32_0 = arith.constant 0 : i32
    return %arg0, %c0_i32 : i32, i32
  }
}

</mosaic_0001>

<bundles_post_ra>
// kernel: tpu_custom_call.1
= control target key start
LH: loop header
LB: loop body
LE: loop exit
PB: predicated region body
PF: predicated region fallthrough
CT: control target
= control target key end

     0   :  { %6 = vsyncpa [#allocation3], 0  ;;  %s525_s0 = inlined_call_operand.hbm [shape: f32[16,128], index: 0, kind: input, shape index: {}]   ;;  %s526_s1 = inlined_call_operand.hbm [shape: f32[16,128], index: 1, kind: output, shape index: {}]  }
   0x1   :  { %8 = vsyncpa [#allocation3 + $0x1], 0 }
   0x2   :  { %9 = vsyncpa [#allocation4], 0 }
   0x3   :  { %11 = vsyncpa [#allocation4 + $0x1], 0  ;;  %s398_s6 = smov 0   ;;  %s400_s7 = smov 0  }
   0x4   :  { %s402_s8 = smov 0   ;;  %s404_s9 = smov 0  }
   0x5 LB: > { %s419_s10 = sadd.s32 4294967295, %s386_s9   ;;  %s230_s11 = sadd.s32 4294967294, %s386_s9   ;;  %s386_s9 = sphi %s404_s9, %s536_s9   ;;  %s382_s8 = sphi %s402_s8, %s535_s8   ;;  %s378_s7 = sphi %s400_s7, %s534_s7   ;;  %s374_s6 = sphi %s398_s6, %s533_s6  }
   0x6   : > { %s423_s12 = sadd.s32 1, %s386_s9   ;;  %s24_s13 = sadd.s32 1, %s382_s8 }
   0x7   : > { %s21_s14 = ssub.s32 %s386_s9, %s423_s12  ;;  %p31_p0 = scmp.ne.s32.totalorder %s382_s8, %s378_s7 }
   0x8   : > { %p22_p1 = scmp.eq.s32.totalorder %s21_s14, 0  ;;  %p32_p2 = scmp.eq.s32.totalorder %s386_s9, 0 }
   0x9   : > { %p37_p3 = scmp.ne.s32.totalorder %s378_s7, %s374_s6  ;;  %p38_p4 = scmp.eq.s32.totalorder %s419_s10, 0 }
   0xa   : > { %s435_s15 = scalar_select %p22_p1, %s382_s8, %s24_s13  }
   0xb   : > { %p437_p5 = por %p32_p2, %p31_p0  ;;  %p441_p6 = por %p38_p4, %p37_p3 }
   0xc   : > { %p61_p7 = scmp.eq.s32.totalorder %s419_s10, 1  ;;  %p67_p8 = scmp.eq.s32.totalorder %s230_s11, 1 }
   0xd   : > { %p254_p10 = scmp.lt.s32.totalorder %s386_s9, 2  ;;  %s87_s20 = sand.u32 1, %s382_s8  }
   0xe   : > { %p448_p11 = por %p61_p7, %p31_p0  ;;  %p452_p12 = por %p67_p8, %p37_p3 }
   0xf   : > { %s234_s21 = sshll.u32 %s386_s9, 3  ;;  %s233_s22 = sshll.u32 %s87_s20, 3 }
  0x10   : > { %s95_s25 = scalar_lea.hbm %s525_s0, %s234_s21  ;;  %s91_s27 = scalar_lea.vmem [#allocation2], %s233_s22 }
  0x11   : > { %s97_s26 = sshll.u32 %s95_s25, 4  ;;  %s99_s28 = sshll.u32 %s91_s27, 4  ;;  %s98_s26 = int_to_ptr.hbm [resolvable:$true] %s97_s26  ;;  %s100_s28 = int_to_ptr.vmem [resolvable:$true] %s99_s28 }
  0x12   : > { %p463_p13 = pnand %p254_p10, %p437_p5  ;;  %p235_p0 = scmp.ge.s32.totalorder %s386_s9, 1 }
  0x13   : > { %p104_p1 = scmp.lt.s32.totalorder %s386_s9, 3  ;;  %s88_s30 = scalar_lea.sflag [#allocation3], %s87_s20 }
  0x14   : > { %s290_s2 = sshra.s32 %s98_s26, 4  ;;  %p294_p3 = pneg %p463_p13  ;;  %s291_s2 = int_to_ptr.hbm [resolvable:$true] %s290_s2 }
  0x15   : > { %s292_s3 = scalar_lea.hbm %s291_s2, 8  ;;  %s297_s11 = scalar_lea.hbm %s525_s0, 16 }
  0x16   : > { %p293_p2 = scmp.ne.s32.totalorder %s291_s2, %s292_s3  ;;  %p298_p5 = scmp.lt.s32.totalorder %s291_s2, %s525_s0 }
  0x17   : > { %p299_p8 = scmp.lt.s32.totalorder %s297_s11, %s292_s3 }
  0x18   : > { %p295_p4 = pnand %p294_p3, %p293_p2 }
  0x19   : > { %p300_p10 = por %p299_p8, %p298_p5 }
  0x1a   : > { %p296_p7 = pneg %p295_p4 }
  0x1c   : > { %p301_p9 = pnand %p300_p10, %p296_p7 }
  0x1e   : > { %304 = shalt.err (!%p301_p9)
}
  0x1f   : > { %249 = dma.hbm_to_vmem [thread:$0]  (!%p463_p13), %s98_s26, 128, %s100_s28, %s88_s30  }
  0x20   : > { %p105_p2 = pnand %p235_p0, %p104_p1 }
  0x21   : > { %s484_s16 = sand.u32 (!%p105_p2), 1, %s378_s7  }
  0x22   : > { %108 = sbr.rel (%p105_p2) target bundleno = 63 (0x3f), region = 24  ;;  %s236_s20 = sshll.u32 (!%p105_p2), %s484_s16, 3 }
  0x23   : > { %s111_s21 = scalar_lea.sflag (!%p105_p2), [#allocation3], %s484_s16  ;;  %s114_s22 = scalar_lea.vmem (!%p105_p2), [#allocation2], %s236_s20 }
  0x27   : > { %365 = dma.done.wait (%p441_p6), %s111_s21, 128  }
  0x28   : > { %367 = vsyncadd (%p441_p6), %s111_s21, 4294967168  ;;  %v134_v0 = vld [vmem:[%s114_s22] sm:$0xff]  ;;  %s239_s23 = sshll.u32 %s419_s10, 3  ;;  %s133_s27 = scalar_lea.vmem [#allocation5], %s236_s20 }
  0x29   : > { %v135_v1 = vmul.f32 %v134_v0, %v134_v0  ;;  %s155_s26 = scalar_lea.hbm %s526_s1, %s239_s23  ;;  %v139_v5 = vmul.f32 0.5, %v134_v0  ;;  %s157_s28 = sshll.u32 %s133_s27, 4  ;;  %s158_s28 = int_to_ptr.vmem [resolvable:$true] %s157_s28 }
  0x2a   : > { %s159_s17 = sshll.u32 %s155_s26, 4  ;;  %s145_s29 = scalar_lea.sflag [#allocation4], %s484_s16  ;;  %s160_s17 = int_to_ptr.hbm [resolvable:$true] %s159_s17 }
  0x2b   : > { %v136_v2 = vmul.f32 0.035677407, %v135_v1  ;;  %s334_s30 = sshra.s32 %s160_s17, 4  ;;  %s340_s4 = scalar_lea.hbm %s526_s1, 16  ;;  %s335_s30 = int_to_ptr.hbm [resolvable:$true] %s334_s30 }
  0x2c   : > { %s336_s2 = scalar_lea.hbm %s335_s30, 8  ;;  %p341_p0 = scmp.lt.s32.totalorder %s335_s30, %s526_s1 }
  0x2d   : > { %v137_v3 = vadd.f32 0.7978846, %v136_v2  ;;  %p337_p6 = scmp.ne.s32.totalorder %s335_s30, %s336_s2  ;;  %p342_p1 = scmp.lt.s32.totalorder %s340_s4, %s336_s2 }
  0x2f   : > { %v138_v4 = vmul.f32 %v137_v3, %v134_v0  ;;  %p338_p9 = pnand %p337_p6, %p448_p11  ;;  %p343_p3 = por %p342_p1, %p341_p0 }
  0x31   : > { %288 = vtanh.f32 %v138_v4  ;;  %p339_p13 = pneg %p338_p9 }
  0x33   : > { %p344_p4 = pnand %p343_p3, %p339_p13 }
  0x37   : > { %v289_v6 = vpop.eup %288 }
  0x38   : > { %v141_v7 = vadd.f32 1.0, %v289_v6 }
  0x3a   : > { %v142_v8 = vmul.f32 %v141_v7, %v139_v5 }
  0x3c   : > { %143 = vst [vmem:[%s133_s27] sm:$0xff] %v142_v8 }
  0x3d   : > { %347 = shalt.err (!%p344_p4)
}
  0x3e   : > { %244 = dma.vmem_to_hbm [thread:$0]  (%p448_p11), %s158_s28, 128, %s160_s17, %s145_s29  }
  0x3f PF: > { %s171_s13 = sand.u32 1, %s374_s6   ;;  %p532_p7 = scmp.ge.s32.totalorder %s386_s9, 2 }
  0x40   : > { %s172_s14 = scalar_lea.sflag [#allocation4], %s171_s13 }
  0x41   : > { %p251_p5 = pnand %p532_p7, %p452_p12 }
  0x43   : > { %p252_p8 = pneg %p251_p5 }
  0x45   : > { %369 = dma.done.wait (%p252_p8), %s172_s14, 128  }
  0x46   : > { %371 = vsyncadd (%p252_p8), %s172_s14, 4294967168  ;;  %p14_p10 = scmp.ge.s32.totalorder %s423_s12, 4   ;;  %s533_s6 = smov %s378_s7 }
  0x47   : > { %s534_s7 = smov %s382_s8  ;;  %s535_s8 = smov %s435_s15 }
  0x48   : > { %s536_s9 = smov %s423_s12  ;;  %16 = sbr.rel (!%p14_p10) target bundleno = 5 (0x5), region = 69 }
  0x4d   :  { %178 = vsyncpa [#allocation3], 1 }
  0x4e   :  { %180 = vsyncpa [#allocation3 + $0x1], 1 }
  0x4f   :  { %181 = vsyncpa [#allocation4], 1 }
  0x50   :  { %183 = vsyncpa [#allocation4 + $0x1], 1 }

</bundles_post_ra>
